<compile_context>
chip_gen: v7x
topology: tpu7x:2x2x1
jax: 0.10.0
libtpu: 0.0.40
codegen_flags: <defaults>
</compile_context>

<pallas_src>
import functools

import jax
import jax.numpy as jnp
from jax.experimental import pallas as pl
from jax.experimental.pallas import tpu as pltpu


def _round_up(x: int, m: int) -> int:
    return ((x + m - 1) // m) * m


def _choose_tm(m: int, dp: int, in_bytes: int, out_bytes: int, w_bytes: int,
               budget_bytes: int = 24 * 1024 * 1024) -> int:
    """Largest row-tile that fits the (conservative) VMEM budget.

    Budget accounting (double-buffered pipeline):
      x tile, x2 tile, out tile: 2 buffers each; fused weight (2*Dp, Dp) and
      bias kept resident (counted x2 to be safe).
    """
    resident = 2 * (2 * dp) * dp * w_bytes + 2 * dp * 4
    per_row = dp * (2 * in_bytes + 2 * in_bytes + 2 * out_bytes)
    tm = (budget_bytes - resident) // max(per_row, 1)
    tm = max(8, min(int(tm), 1024, _round_up(m, 8)))
    return (tm // 8) * 8


def _residual2_kernel(x_ref, x2_ref, w_ref, b_ref, o_ref):
    """out = [x | x2] @ [[W1],[W2]] + b + x   (fn(x, x2) + x, fused)."""
    x = x_ref[...]
    x2 = x2_ref[...]

    # Single fused MXU pass, K = 2*Dp (native input dtype feeds the MXU,
    # f32 accumulation via preferred_element_type).
    lhs = jnp.concatenate([x, x2], axis=-1)
    y = jnp.dot(lhs, w_ref[...], preferred_element_type=jnp.float32)

    # Bias + residual in f32; single cast at the store.
    y = y + b_ref[...].astype(jnp.float32)
    y = y + x.astype(jnp.float32)
    o_ref[...] = y.astype(o_ref.dtype)


@functools.partial(jax.jit, static_argnames=())
def residual2(x, x2, w1, w2, b):
    """Residual2 with fn = siamese linear fusion.

    Args:
      x, x2: [B, N, D] arrays (same shape/dtype).
      w1, w2: [D, D] weights of fn.
      b: [D] bias of fn.

    Returns:
      [B, N, D] array:  fn(x, x2) + x
    """
    assert x.shape == x2.shape
    B, N, D = x.shape
    M = B * N

    Dp = _round_up(D, 128)                      # lane-dense output dimension
    in_bytes = jnp.dtype(x.dtype).itemsize
    out_bytes = in_bytes
    w_bytes = jnp.dtype(w1.dtype).itemsize

    TM = _choose_tm(M, Dp, in_bytes, out_bytes, w_bytes)
    Mp = _round_up(M, TM)

    # Zero-pad activations / params once in the wrapper (padded columns of
    # W/b are zero, padded lanes of x are zero -> padded output stays inert).
    x_2d = jnp.pad(x.reshape(M, D), ((0, Mp - M), (0, Dp - D)))
    x2_2d = jnp.pad(x2.reshape(M, D), ((0, Mp - M), (0, Dp - D)))
    w1_p = jnp.pad(w1, ((0, Dp - D), (0, Dp - D)))
    w2_p = jnp.pad(w2, ((0, Dp - D), (0, Dp - D)))
    w_fused = jnp.concatenate([w1_p, w2_p], axis=0)        # (2*Dp, Dp)
    b_2d = jnp.pad(b.reshape(1, D), ((0, 0), (0, Dp - D)))  # (1, Dp)

    grid = (Mp // TM,)

    cost = pl.CostEstimate(
        flops=2 * Mp * (2 * Dp) * Dp + 2 * Mp * Dp,
        transcendentals=0,
        bytes_accessed=(2 * Mp * Dp * in_bytes            # x, x2
                        + Mp * Dp * out_bytes             # out
                        + 2 * Dp * Dp * w_bytes           # fused weights
                        + Dp * 4),                        # bias
    )

    out_2d = pl.pallas_call(
        _residual2_kernel,
        out_shape=jax.ShapeDtypeStruct((Mp, Dp), x.dtype),
        grid=grid,
        in_specs=[
            pl.BlockSpec((TM, Dp), lambda i: (i, 0)),          # x tile
            pl.BlockSpec((TM, Dp), lambda i: (i, 0)),          # x2 tile
            pl.BlockSpec((2 * Dp, Dp), lambda i: (0, 0)),      # fused W (resident)
            pl.BlockSpec((1, Dp), lambda i: (0, 0)),           # bias (resident)
        ],
        out_specs=pl.BlockSpec((TM, Dp), lambda i: (i, 0)),
        compiler_params=pltpu.CompilerParams(
            dimension_semantics=("parallel",)),
        cost_estimate=cost,
    )(x_2d, x2_2d, w_fused, b_2d)

    return out_2d[:M, :D].reshape(B, N, D)


if __name__ == "__main__":
    key = jax.random.PRNGKey(0)
    k_x, k_x2, k_w1, k_w2, k_b = jax.random.split(key, 5)

    B, N, D = 2, 8, 32  # batch=2, seq=8, hidden=32

    x = jax.random.normal(k_x, (B, N, D), dtype=jnp.float32)
    x2 = jax.random.normal(k_x2, (B, N, D), dtype=jnp.float32)
    # Deterministic parameter init for fn (siamese linear fusion).
    w1 = jax.random.normal(k_w1, (D, D), dtype=jnp.float32) * 0.02
    w2 = jax.random.normal(k_w2, (D, D), dtype=jnp.float32) * 0.02
    b = jax.random.normal(k_b, (D,), dtype=jnp.float32) * 0.01

    out = residual2(x, x2, w1, w2, b)
    out = jax.block_until_ready(out)

    # Reference in plain JAX: fn(x, x2) + x
    ref = (jnp.einsum("bnd,de->bne", x, w1)
           + jnp.einsum("bnd,de->bne", x2, w2)
           + b) + x
    assert out.shape == (B, N, D)
    assert jnp.allclose(out, ref, atol=1e-5, rtol=1e-5), (
        float(jnp.max(jnp.abs(out - ref))))

    print("KERNEL_OK")
</pallas_src>

<mosaic_0001>
module attributes {stable_mosaic.version = 11 : i64} {
  func.func @_residual2_kernel(%arg0: i32, %arg1: memref<16x128xf32, #tpu.memory_space<vmem>>, %arg2: memref<16x128xf32, #tpu.memory_space<vmem>>, %arg3: memref<256x128xf32, #tpu.memory_space<vmem>>, %arg4: memref<1x128xf32, #tpu.memory_space<vmem>>, %arg5: memref<16x128xf32, #tpu.memory_space<vmem>>) attributes {dimension_semantics = [#tpu.dimension_semantics<parallel>], iteration_bounds = array<i64: 1>, scalar_prefetch = 0 : i64, scratch_operands = 0 : i64, tpu.core_type = #tpu.core_type<tc>, window_params = [{transform_indices = @transform_0, window_bounds = array<i64: 16, 128>}, {transform_indices = @transform_1, window_bounds = array<i64: 16, 128>}, {pipeline_mode = #tpu.pipeline_mode<synchronous>, transform_indices = @transform_2, window_bounds = array<i64: 256, 128>}, {pipeline_mode = #tpu.pipeline_mode<synchronous>, transform_indices = @transform_3, window_bounds = array<i64: 1, 128>}, {transform_indices = @transform_4, window_bounds = array<i64: 16, 128>}]} {
    %c0 = arith.constant 0 : index
    %c0_0 = arith.constant 0 : index
    %0 = vector.load %arg1[%c0, %c0_0] : memref<16x128xf32, #tpu.memory_space<vmem>>, vector<16x128xf32>
    %c0_1 = arith.constant 0 : index
    %c0_2 = arith.constant 0 : index
    %1 = vector.load %arg2[%c0_1, %c0_2] : memref<16x128xf32, #tpu.memory_space<vmem>>, vector<16x128xf32>
    %2 = tpu.concatenate %0, %1 in 1 : vector<16x128xf32>, vector<16x128xf32> -> vector<16x256xf32>
    %c0_3 = arith.constant 0 : index
    %c0_4 = arith.constant 0 : index
    %3 = vector.load %arg3[%c0_3, %c0_4] : memref<256x128xf32, #tpu.memory_space<vmem>>, vector<256x128xf32>
    %cst = arith.constant dense<0.000000e+00> : vector<16x128xf32>
    %4 = tpu.matmul %2, %3, %cst {dimension_numbers = #tpu.dot_dimension_numbers<[1], [0], [0], [1], [0, 0, 1, 1], [], []>} : vector<16x256xf32>, vector<256x128xf32>, vector<16x128xf32> -> vector<16x128xf32>
    %c0_5 = arith.constant 0 : index
    %c0_6 = arith.constant 0 : index
    %5 = vector.load %arg4[%c0_5, %c0_6] : memref<1x128xf32, #tpu.memory_space<vmem>>, vector<1x128xf32>
    %6 = vector.broadcast %5 : vector<1x128xf32> to vector<16x128xf32>
    %7 = arith.addf %4, %6 : vector<16x128xf32>
    %8 = arith.addf %7, %0 : vector<16x128xf32>
    %c0_7 = arith.constant 0 : index
    %c0_8 = arith.constant 0 : index
    %9 = vector.load %arg5[%c0_7, %c0_8] : memref<16x128xf32, #tpu.memory_space<vmem>>, vector<16x128xf32>
    tpu.vector_store %arg5[%c0_7, %c0_8], %8 {strides = array<i32>} : memref<16x128xf32, #tpu.memory_space<vmem>>, vector<16x128xf32>,
    return
  }
  func.func @transform_0(%arg0: i32) -> (i32, i32) {
    %c0_i32 = arith.constant 0 : i32
    %c0_i32_0 = arith.constant 0 : i32
    return %arg0, %c0_i32 : i32, i32
  }
  func.func @transform_1(%arg0: i32) -> (i32, i32) {
    %c0_i32 = arith.constant 0 : i32
    %c0_i32_0 = arith.constant 0 : i32
    return %arg0, %c0_i32 : i32, i32
  }
  func.func @transform_2(%arg0: i32) -> (i32, i32) {
    %c0_i32 = arith.constant 0 : i32
    %c0_i32_0 = arith.constant 0 : i32
    %c0_i32_1 = arith.constant 0 : i32
    return %c0_i32, %c0_i32_0 : i32, i32
  }
  func.func @transform_3(%arg0: i32) -> (i32, i32) {
    %c0_i32 = arith.constant 0 : i32
    %c0_i32_0 = arith.constant 0 : i32
    %c0_i32_1 = arith.constant 0 : i32
    return %c0_i32, %c0_i32_0 : i32, i32
  }
  func.func @transform_4(%arg0: i32) -> (i32, i32) {
    %c0_i32 = arith.constant 0 : i32
    %c0_i32_0 = arith.constant 0 : i32
    return %arg0, %c0_i32 : i32, i32
  }
}

</mosaic_0001>

<bundles_post_ra>
// kernel: residual2.1
= control target key start
LH: loop header
LB: loop body
LE: loop exit
PB: predicated region body
PF: predicated region fallthrough
CT: control target
= control target key end

     0   :  { %s372_s2 = inlined_call_operand.vmem [shape: f32[256,128], index: 2, kind: input, shape index: {}]   ;;  %s373_s1 = inlined_call_operand.vmem [shape: f32[16,128], index: 1, kind: input, shape index: {}]   ;;  %s374_s0 = inlined_call_operand.vmem [shape: f32[16,128], index: 0, kind: input, shape index: {}]   ;;  %s375_s3 = inlined_call_operand.vmem [shape: f32[1,128], index: 3, kind: input, shape index: {}]   ;;  %s376_s4 = inlined_call_operand.vmem [shape: f32[16,128], index: 4, kind: output, shape index: {}]  }
   0x1   :  { %v37_v0 = vld [vmem:[%s372_s2 + $0x80] sm:$0xff]  ;;  %v38_v1 = vld [vmem:[%s372_s2 + $0x88] sm:$0xff]  ;;  %v39_v5 = vld [vmem:[%s372_s2 + $0x90] sm:$0xff] }
   0x2   :  { %v21_v2 = vld [vmem:[%s372_s2] sm:$0xff]  ;;  %v182_v3 = vpack.c.bf16 %v38_v1, %v37_v0  ;;  %v22_v4 = vld [vmem:[%s372_s2 + $0x8] sm:$0xff]  ;;  %v40_v6 = vld [vmem:[%s372_s2 + $0x98] sm:$0xff] }
   0x3   :  { %v184_v7 = vpack.c.bf16 %v22_v4, %v21_v2  ;;  %v186_v8 = vpack.c.bf16 %v40_v6, %v39_v5  ;;  %v23_v9 = vld [vmem:[%s372_s2 + $0x10] sm:$0xff]  ;;  %v24_v10 = vld [vmem:[%s372_s2 + $0x18] sm:$0xff]  ;;  %v41_v11 = vld [vmem:[%s372_s2 + $0xa0] sm:$0xff] }
   0x4   :  { %183 = vmatprep.subr.bf16.mxu0 %v182_v3  ;;  %214 = vmatprep.subr.bf16.mxu1 %v182_v3  ;;  %v42_v12 = vld [vmem:[%s372_s2 + $0xa8] sm:$0xff]  ;;  %v188_v13 = vpack.c.bf16 %v24_v10, %v23_v9  ;;  %v25_v15 = vld [vmem:[%s372_s2 + $0x20] sm:$0xff]  ;;  %v43_v17 = vld [vmem:[%s372_s2 + $0xb0] sm:$0xff] }
   0x5   :  { %185 = vmatpush3.bf16.msra.mxu0 %v184_v7  ;;  %222 = vmatpush3.bf16.msra.mxu1 %v184_v7  ;;  %v190_v14 = vpack.c.bf16 %v42_v12, %v41_v11  ;;  %v26_v16 = vld [vmem:[%s372_s2 + $0x28] sm:$0xff]  ;;  %v44_v18 = vld [vmem:[%s372_s2 + $0xb8] sm:$0xff]  ;;  %v27_v21 = vld [vmem:[%s372_s2 + $0x30] sm:$0xff] }
   0x6   :  { %187 = vmatprep.subr.bf16.mxu0 %v186_v8  ;;  %215 = vmatprep.subr.bf16.mxu1 %v186_v8  ;;  %v192_v19 = vpack.c.bf16 %v26_v16, %v25_v15  ;;  %v194_v20 = vpack.c.bf16 %v44_v18, %v43_v17  ;;  %v28_v22 = vld [vmem:[%s372_s2 + $0x38] sm:$0xff]  ;;  %v45_v23 = vld [vmem:[%s372_s2 + $0xc0] sm:$0xff]  ;;  %v46_v24 = vld [vmem:[%s372_s2 + $0xc8] sm:$0xff] }
   0x7   :  { %v19_v25 = vld [vmem:[%s373_s1] sm:$0xff]  ;;  %v20_v26 = vld [vmem:[%s373_s1 + $0x8] sm:$0xff]  ;;  %v196_v27 = vpack.c.bf16 %v28_v22, %v27_v21  ;;  %v198_v28 = vpack.c.bf16 %v46_v24, %v45_v23  ;;  %v47_v31 = vld [vmem:[%s372_s2 + $0xd0] sm:$0xff] }
   0x8   :  { %124 = vmatprep.mubr.f32.mxu0 %v19_v25  ;;  %v29_v29 = vld [vmem:[%s372_s2 + $0x40] sm:$0xff]  ;;  %v30_v30 = vld [vmem:[%s372_s2 + $0x48] sm:$0xff]  ;;  %v48_v32 = vld [vmem:[%s372_s2 + $0xd8] sm:$0xff]  ;;  %129 = vmatprep.mubr.f32.mxu1 %v20_v26 }
   0x9   :  { %189 = vmatpush3.bf16.msra.mxu0 %v188_v13  ;;  %223 = vmatpush3.bf16.msra.mxu1 %v188_v13  ;;  %v200_v33 = vpack.c.bf16 %v30_v30, %v29_v29  ;;  %v202_v34 = vpack.c.bf16 %v48_v32, %v47_v31  ;;  %v31_v35 = vld [vmem:[%s372_s2 + $0x50] sm:$0xff]  ;;  %v32_v36 = vld [vmem:[%s372_s2 + $0x58] sm:$0xff]  ;;  %v49_v37 = vld [vmem:[%s372_s2 + $0xe0] sm:$0xff] }
   0xa   :  { %191 = vmatprep.subr.bf16.mxu0 %v190_v14  ;;  %216 = vmatprep.subr.bf16.mxu1 %v190_v14  ;;  %v50_v38 = vld [vmem:[%s372_s2 + $0xe8] sm:$0xff]  ;;  %v204_v39 = vpack.c.bf16 %v32_v36, %v31_v35  ;;  %v33_v41 = vld [vmem:[%s372_s2 + $0x60] sm:$0xff]  ;;  %v51_v43 = vld [vmem:[%s372_s2 + $0xf0] sm:$0xff] }
   0xb   :  { %v206_v40 = vpack.c.bf16 %v50_v38, %v49_v37  ;;  %v34_v42 = vld [vmem:[%s372_s2 + $0x68] sm:$0xff]  ;;  %v52_v44 = vld [vmem:[%s372_s2 + $0xf8] sm:$0xff]  ;;  %v35_v47 = vld [vmem:[%s372_s2 + $0x70] sm:$0xff] }
   0xc   :  { %v208_v45 = vpack.c.bf16 %v34_v42, %v33_v41  ;;  %v210_v46 = vpack.c.bf16 %v52_v44, %v51_v43  ;;  %v36_v48 = vld [vmem:[%s372_s2 + $0x78] sm:$0xff]  ;;  %v17_v50 = vld [vmem:[%s374_s0] sm:$0xff]  ;;  %v18_v51 = vld [vmem:[%s374_s0 + $0x8] sm:$0xff] }
   0xd   :  { %193 = vmatpush3.bf16.msra.mxu0 %v192_v19  ;;  %224 = vmatpush3.bf16.msra.mxu1 %v192_v19  ;;  %v212_v49 = vpack.c.bf16 %v36_v48, %v35_v47  ;;  %v143_v54 = vld [vmem:[%s375_s3] ss:$0 sm:$0xff] }
   0xe   :  { %195 = vmatprep.subr.bf16.mxu0 %v194_v20  ;;  %217 = vmatprep.subr.bf16.mxu1 %v194_v20 }
  0x11   :  { %197 = vmatpush3.bf16.msra.mxu0 %v196_v27  ;;  %225 = vmatpush3.bf16.msra.mxu1 %v196_v27 }
  0x12   :  { %199 = vmatprep.subr.bf16.mxu0 %v198_v28  ;;  %218 = vmatprep.subr.bf16.mxu1 %v198_v28 }
  0x15   :  { %201 = vmatpush3.bf16.msra.mxu0 %v200_v33  ;;  %226 = vmatpush3.bf16.msra.mxu1 %v200_v33 }
  0x16   :  { %203 = vmatprep.subr.bf16.mxu0 %v202_v34  ;;  %219 = vmatprep.subr.bf16.mxu1 %v202_v34 }
  0x19   :  { %205 = vmatpush3.bf16.msra.mxu0 %v204_v39  ;;  %227 = vmatpush3.bf16.msra.mxu1 %v204_v39 }
  0x1a   :  { %207 = vmatprep.subr.bf16.mxu0 %v206_v40  ;;  %220 = vmatprep.subr.bf16.mxu1 %v206_v40 }
  0x1d   :  { %209 = vmatpush3.bf16.msra.mxu0 %v208_v45  ;;  %228 = vmatpush3.bf16.msra.mxu1 %v208_v45 }
  0x1e   :  { %211 = vmatprep.subr.bf16.mxu0 %v210_v46  ;;  %221 = vmatprep.subr.bf16.mxu1 %v210_v46 }
  0x21   :  { %213 = vmatpush3.bf16.msra.mxu0 %v212_v49  ;;  %229 = vmatpush3.bf16.msra.mxu1 %v212_v49 }
  0x24   :  { %125 = vmatmul.mubr.f32.vlgmr.msra.gmra.mrb[0].mxu0 %v17_v50  ;;  %130 = vmatmul.mubr.f32.vlgmr.msra.gmra.mrb[0].mxu1 %v18_v51 }
  0xf7   :  { %v176_v52 = vpop.f32.mrb[0].mxu0  ;;  %v179_v53 = vpop.f32.mrb[0].mxu1 }
  0xf8   :  { %v177_v55 = vpop.f32.mrb[1].mxu0  ;;  %v180_v56 = vpop.f32.mrb[1].mxu1 }
  0xf9   :  { %v178_v57 = vadd.f32 %v177_v55, %v176_v52  ;;  %v181_v58 = vadd.f32 %v180_v56, %v179_v53 }
  0xfb   :  { %v127_v59 = vadd.f32 %v178_v57, %v143_v54  ;;  %v132_v60 = vadd.f32 %v181_v58, %v143_v54 }
  0xfd   :  { %v135_v61 = vadd.f32 %v127_v59, %v17_v50  ;;  %v136_v62 = vadd.f32 %v132_v60, %v18_v51 }
  0xff   :  { %137 = vst [vmem:[%s376_s4] sm:$0xff] %v135_v61  ;;  %138 = vst [vmem:[%s376_s4 + $0x8] sm:$0xff] %v136_v62 }

</bundles_post_ra>
